<compile_context>
chip_gen: v5e
topology: v5e:2x2
jax: 0.10.0
libtpu: 0.0.40
codegen_flags: <defaults>
</compile_context>

<pallas_src>
import functools

import jax
import jax.numpy as jnp
from jax import lax
from jax.experimental import pallas as pl
from jax.experimental.pallas import tpu as pltpu

TUMOR_CLASS = 2
_VMEM_BUDGET_BYTES = 10 * 1024 * 1024   # conservative vs v5e/v6e/v7x scoped defaults
_VMEM_LIMIT_BYTES = 32 * 1024 * 1024


def _pick_pixel_tile(num_pixels, *, num_classes, bytes_per_pixel_in, cap=None):
    """Largest 128-multiple divisor of P whose per-step footprint fits the budget."""
    if num_pixels % 128 != 0:
        return num_pixels                       # full-extent block (block dim == array dim)
    # Double-buffered inputs + ~(5C+3) live f32 rows of temporaries per pixel.
    vmem_per_pixel = 2 * bytes_per_pixel_in + (5 * num_classes + 3) * 4
    tp = max(_VMEM_BUDGET_BYTES // vmem_per_pixel, 128)
    if cap is not None:
        tp = min(tp, cap)
    tp = min(tp, num_pixels)
    tp -= tp % 128
    tp = max(tp, 128)
    while num_pixels % tp != 0:
        tp -= 128
    return tp


def _stats_kernel(*refs, num_classes, tumor_class, has_weight):
    """Accumulates per-(batch, split) statistics.

    refs (has_weight=True):  pred (1,C,TP), target (1,1,TP), w (1,1,TP), out (1,S,1)
    refs (has_weight=False): pred (1,C,TP), target (1,1,TP),             out (1,S,1)

    out rows: [inter_0..C-1, sum_sm_0..C-1, sum_oh_0..C-1,
               (sum sm_t*w, sum sm_t*oh_t*w, sum oh_t*w, sum sm_t*oh_t*w^2)]
    """
    if has_weight:
        pred_ref, target_ref, w_ref, out_ref = refs
    else:
        pred_ref, target_ref, out_ref = refs

    p = pred_ref[0].astype(jnp.float32)              # (C, TP)
    t = target_ref[0].astype(jnp.int32)              # (1, TP)

    # Channel softmax along the sublane axis; one approx EUP reciprocal instead
    # of a broadcast divide.
    m = jnp.max(p, axis=0, keepdims=True)
    e = jnp.exp(p - m)
    denom = jnp.sum(e, axis=0, keepdims=True)
    sm = e * pl.reciprocal(denom, approx=True)       # (C, TP)

    # Dense one-hot: a single (C, TP) compare, no per-class (1, TP) ops.
    cls = lax.broadcasted_iota(jnp.int32, (num_classes, sm.shape[-1]), 0)
    oh = (cls == t).astype(jnp.float32)              # (C, TP)

    prod = sm * oh                                   # (C, TP)

    # All reductions are lane-axis sums (XLU); no MXU, no (C+4, TP) concats.
    inter = jnp.sum(prod, axis=-1, keepdims=True)    # (C, 1)  sum(sm_c * oh_c)
    sum_sm = jnp.sum(sm, axis=-1, keepdims=True)     # (C, 1)  sum(sm_c)
    sum_oh = jnp.sum(oh, axis=-1, keepdims=True)     # (C, 1)  sum(oh_c)
    pieces = [inter, sum_sm, sum_oh]

    if has_weight:
        w = w_ref[0].astype(jnp.float32)             # (1, TP)
        sm_t = sm[tumor_class:tumor_class + 1]
        oh_t = oh[tumor_class:tumor_class + 1]
        prod_t = prod[tumor_class:tumor_class + 1]
        pieces += [
            jnp.sum(sm_t * w, axis=-1, keepdims=True),          # sum(sm_t * w)
            jnp.sum(prod_t * w, axis=-1, keepdims=True),        # sum(sm_t * oh_t * w)
            jnp.sum(oh_t * w, axis=-1, keepdims=True),          # sum(oh_t * w)
            jnp.sum(prod_t * (w * w), axis=-1, keepdims=True),  # sum(sm_t * oh_t * w^2)
        ]

    stats = jnp.concatenate(pieces, axis=0)          # (S, 1) — tiny, one vreg

    @pl.when(pl.program_id(2) == 0)
    def _():
        out_ref[...] = jnp.zeros(out_ref.shape, jnp.float32)

    out_ref[0] += stats


def recall_focused_loss(pred, target, weight_map=None,
                        recall_weight=2.0, size_weight=1.5, smooth=1e-5,
                        pixel_tile_cap=None):
    """JAX/Pallas equivalent of RecallFocusedLoss.forward."""
    B, C, H, W = pred.shape
    if TUMOR_CLASS >= C:
        raise ValueError(f"tumor_class {TUMOR_CLASS} requires num_classes > {TUMOR_CLASS}")

    has_weight = weight_map is not None
    P = H * W
    bytes_in = (C * pred.dtype.itemsize + target.dtype.itemsize
                + (weight_map.dtype.itemsize if has_weight else 0))
    TP = _pick_pixel_tile(P, num_classes=C, bytes_per_pixel_in=bytes_in,
                          cap=pixel_tile_cap)
    num_tiles = P // TP
    # 2-way pixel-axis split on a "parallel" grid dim (fills v7x's 2nd TC at small B).
    split = 2 if (num_tiles % 2 == 0 and num_tiles >= 2) else 1
    tiles_per_split = num_tiles // split
    S = 3 * C + (4 if has_weight else 0)

    # Layout plumbing only (free HBM reshapes); no dtype widening in the wrapper —
    # bf16 pred / narrow int targets pass straight through and are cast in-kernel.
    pred2 = pred.reshape(B, C, P)
    target2 = target.reshape(B, 1, P)

    def pix_map(b, s, i):
        return (b, 0, s * tiles_per_split + i)

    in_specs = [
        pl.BlockSpec((1, C, TP), pix_map),
        pl.BlockSpec((1, 1, TP), pix_map),
    ]
    args = [pred2, target2]
    if has_weight:
        in_specs.append(pl.BlockSpec((1, 1, TP), pix_map))
        args.append(weight_map.reshape(B, 1, P))

    kernel = functools.partial(_stats_kernel, num_classes=C,
                               tumor_class=TUMOR_CLASS, has_weight=has_weight)

    stats = pl.pallas_call(
        kernel,
        out_shape=jax.ShapeDtypeStruct((B * split, S, 1), jnp.float32),
        grid_spec=pltpu.PrefetchScalarGridSpec(
            num_scalar_prefetch=0,
            grid=(B, split, tiles_per_split),
            in_specs=in_specs,
            out_specs=pl.BlockSpec((1, S, 1),
                                   lambda b, s, i: (b * split + s, 0, 0)),
        ),
        compiler_params=pltpu.CompilerParams(
            dimension_semantics=("parallel", "parallel", "arbitrary"),
            vmem_limit_bytes=_VMEM_LIMIT_BYTES),
    )(*args)

    # Combine per-split partials; everything below is tiny (B, S) glue.
    stats = stats.reshape(B, split, S).sum(axis=1)   # (B, S)

    inter = stats[:, 0:C]                            # sum(sm_c * oh_c)
    sum_sm = stats[:, C:2 * C]                       # sum(sm_c)
    sum_oh = stats[:, 2 * C:3 * C]                   # sum(oh_c)
    card = sum_sm + sum_oh

    tp = inter[:, TUMOR_CLASS]
    t_sum = sum_oh[:, TUMOR_CLASS]
    fn = t_sum - tp                                  # sum((1 - sm_t) * oh_t)

    if has_weight:
        sm_t_w = stats[:, 3 * C + 0]                 # sum(sm_t * w)
        sm_t_oh_w = stats[:, 3 * C + 1]              # sum(sm_t * oh_t * w)
        oh_t_w = stats[:, 3 * C + 2]                 # sum(oh_t * w)
        w_inter = stats[:, 3 * C + 3]                # sum(sm_t * oh_t * w^2)
        w_card = sm_t_w + oh_t_w
        fnw = oh_t_w - sm_t_oh_w                     # sum(w * (1 - sm_t) * oh_t)

    # Dice loss (per class, averaged over batch then classes).
    dice_loss = 0.0
    for c in range(C):
        if c == TUMOR_CLASS and has_weight:
            I, K = w_inter, w_card
        else:
            I, K = inter[:, c], card[:, c]
        dice = (2.0 * I + smooth) / (K + smooth)
        dice_loss = dice_loss + (1.0 - jnp.mean(dice))
    dice_loss = dice_loss / C

    # Recall-focused term (tumor class).
    if has_weight:
        fn_weights = fnw / (t_sum + smooth) * size_weight
        weighted_fn = fn * (1.0 + fn_weights)
        recall_loss = weighted_fn / (tp + weighted_fn + smooth)
    else:
        recall_loss = fn / (tp + fn + smooth)
    recall_loss = jnp.mean(recall_loss)

    return dice_loss + recall_weight * recall_loss


def _reference_loss(pred, target, weight_map=None,
                    recall_weight=2.0, size_weight=1.5, smooth=1e-5):
    """Pure-JAX reference mirroring the PyTorch forward (for sanity check)."""
    B, C, H, W = pred.shape
    sm = jax.nn.softmax(pred.astype(jnp.float32), axis=1)
    oh = jax.nn.one_hot(target, C, axis=1, dtype=jnp.float32)
    dice_loss = 0.0
    for c in range(C):
        pc, tc = sm[:, c], oh[:, c]
        if c == TUMOR_CLASS and weight_map is not None:
            wp, wt = pc * weight_map, tc * weight_map
            I = jnp.sum(wp * wt, axis=(1, 2))
            K = jnp.sum(wp + wt, axis=(1, 2))
        else:
            I = jnp.sum(pc * tc, axis=(1, 2))
            K = jnp.sum(pc + tc, axis=(1, 2))
        dice_loss += 1.0 - jnp.mean((2.0 * I + smooth) / (K + smooth))
    dice_loss = dice_loss / C
    p_t, t_t = sm[:, TUMOR_CLASS], oh[:, TUMOR_CLASS]
    tp = jnp.sum(p_t * t_t, axis=(1, 2))
    fn = jnp.sum((1.0 - p_t) * t_t, axis=(1, 2))
    if weight_map is not None:
        fnw = jnp.sum(weight_map * (1.0 - p_t) * t_t, axis=(1, 2))
        fnw = fnw / (jnp.sum(t_t, axis=(1, 2)) + smooth) * size_weight
        wfn = fn * (1.0 + fnw)
        recall_loss = wfn / (tp + wfn + smooth)
    else:
        recall_loss = fn / (tp + fn + smooth)
    return dice_loss + recall_weight * jnp.mean(recall_loss)


if __name__ == "__main__":
    key = jax.random.PRNGKey(0)
    k1, k2, k3 = jax.random.split(key, 3)

    B, C, H, W = 2, 4, 32, 32
    pred = jax.random.normal(k1, (B, C, H, W), dtype=jnp.float32)
    target = jax.random.randint(k2, (B, H, W), 0, C, dtype=jnp.int32)
    weight_map = jax.random.uniform(k3, (B, H, W), dtype=jnp.float32,
                                    minval=0.5, maxval=2.0)

    # Weighted path; tile cap forces 8 pixel tiles -> 2-way split x 4-tile accumulation.
    loss_w = jax.block_until_ready(
        recall_focused_loss(pred, target, weight_map, pixel_tile_cap=128))
    ref_w = jax.block_until_ready(_reference_loss(pred, target, weight_map))

    # Unweighted path; single full-extent tile, no weight-map input DMA'd at all.
    loss_nw = jax.block_until_ready(recall_focused_loss(pred, target, None))
    ref_nw = jax.block_until_ready(_reference_loss(pred, target, None))

    assert jnp.allclose(loss_w, ref_w, atol=2e-3, rtol=2e-3), (loss_w, ref_w)
    assert jnp.allclose(loss_nw, ref_nw, atol=2e-3, rtol=2e-3), (loss_nw, ref_nw)

    print("KERNEL_OK")
</pallas_src>

<mosaic_0001>
module attributes {stable_mosaic.version = 11 : i64} {
  func.func @_stats_kernel(%arg0: i32, %arg1: i32, %arg2: i32, %arg3: memref<1x4x128xf32, #tpu.memory_space<vmem>>, %arg4: memref<1x1x128xi32, #tpu.memory_space<vmem>>, %arg5: memref<1x1x128xf32, #tpu.memory_space<vmem>>, %arg6: memref<1x16x1xf32, #tpu.memory_space<vmem>>) attributes {dimension_semantics = [#tpu.dimension_semantics<parallel>, #tpu.dimension_semantics<parallel>, #tpu.dimension_semantics<arbitrary>], iteration_bounds = array<i64: 2, 2, 4>, scalar_prefetch = 0 : i64, scratch_operands = 0 : i64, tpu.core_type = #tpu.core_type<tc>, window_params = [{transform_indices = @transform_0, window_bounds = array<i64: 1, 4, 128>}, {transform_indices = @transform_1, window_bounds = array<i64: 1, 1, 128>}, {transform_indices = @transform_2, window_bounds = array<i64: 1, 1, 128>}, {transform_indices = @transform_3, window_bounds = array<i64: 1, 16, 1>}]} {
    %c0 = arith.constant 0 : index
    %c0_0 = arith.constant 0 : index
    %c0_1 = arith.constant 0 : index
    %0 = vector.load %arg3[%c0, %c0_0, %c0_1] : memref<1x4x128xf32, #tpu.memory_space<vmem>>, vector<1x4x128xf32>
    %1 = vector.shape_cast %0 : vector<1x4x128xf32> to vector<4x128xf32>
    %c0_2 = arith.constant 0 : index
    %c0_3 = arith.constant 0 : index
    %c0_4 = arith.constant 0 : index
    %2 = vector.load %arg4[%c0_2, %c0_3, %c0_4] : memref<1x1x128xi32, #tpu.memory_space<vmem>>, vector<1x1x128xi32>
    %3 = vector.shape_cast %2 : vector<1x1x128xi32> to vector<1x128xi32>
    %cst = arith.constant dense<0xFF800000> : vector<128xf32>
    %4 = vector.multi_reduction <maximumf>, %1, %cst [0] : vector<4x128xf32> to vector<128xf32>
    %5 = vector.shape_cast %4 : vector<128xf32> to vector<1x128xf32>
    %6 = vector.broadcast %5 : vector<1x128xf32> to vector<4x128xf32>
    %7 = arith.subf %1, %6 : vector<4x128xf32>
    %8 = math.exp %7 : vector<4x128xf32>
    %cst_5 = arith.constant dense<0.000000e+00> : vector<128xf32>
    %9 = vector.multi_reduction <add>, %8, %cst_5 [0] : vector<4x128xf32> to vector<128xf32>
    %10 = vector.shape_cast %9 : vector<128xf32> to vector<1x128xf32>
    %11 = tpu.reciprocal %10 {approx = true} : vector<1x128xf32> -> vector<1x128xf32>
    %12 = vector.broadcast %11 : vector<1x128xf32> to vector<4x128xf32>
    %13 = arith.mulf %8, %12 : vector<4x128xf32>
    %14 = tpu.iota {dimensions = array<i32: 0>} : vector<4x128xi32>
    %15 = vector.broadcast %3 : vector<1x128xi32> to vector<4x128xi32>
    %16 = arith.cmpi eq, %14, %15 : vector<4x128xi32>
    %17 = arith.extui %16 : vector<4x128xi1> to vector<4x128xi32>
    %18 = arith.sitofp %17 : vector<4x128xi32> to vector<4x128xf32>
    %19 = arith.mulf %13, %18 : vector<4x128xf32>
    %cst_6 = arith.constant dense<0.000000e+00> : vector<4xf32>
    %20 = vector.multi_reduction <add>, %19, %cst_6 [1] : vector<4x128xf32> to vector<4xf32>
    %21 = vector.shape_cast %20 : vector<4xf32> to vector<4x1xf32>
    %cst_7 = arith.constant dense<0.000000e+00> : vector<4xf32>
    %22 = vector.multi_reduction <add>, %13, %cst_7 [1] : vector<4x128xf32> to vector<4xf32>
    %23 = vector.shape_cast %22 : vector<4xf32> to vector<4x1xf32>
    %cst_8 = arith.constant dense<0.000000e+00> : vector<4xf32>
    %24 = vector.multi_reduction <add>, %18, %cst_8 [1] : vector<4x128xf32> to vector<4xf32>
    %25 = vector.shape_cast %24 : vector<4xf32> to vector<4x1xf32>
    %c0_9 = arith.constant 0 : index
    %c0_10 = arith.constant 0 : index
    %c0_11 = arith.constant 0 : index
    %26 = vector.load %arg5[%c0_9, %c0_10, %c0_11] : memref<1x1x128xf32, #tpu.memory_space<vmem>>, vector<1x1x128xf32>
    %27 = vector.shape_cast %26 : vector<1x1x128xf32> to vector<1x128xf32>
    %28 = vector.extract_strided_slice %13 {offsets = [2, 0], sizes = [1, 128], strides = [1, 1]} : vector<4x128xf32> to vector<1x128xf32>
    %29 = vector.extract_strided_slice %18 {offsets = [2, 0], sizes = [1, 128], strides = [1, 1]} : vector<4x128xf32> to vector<1x128xf32>
    %30 = vector.extract_strided_slice %19 {offsets = [2, 0], sizes = [1, 128], strides = [1, 1]} : vector<4x128xf32> to vector<1x128xf32>
    %31 = arith.mulf %28, %27 : vector<1x128xf32>
    %cst_12 = arith.constant dense<0.000000e+00> : vector<1xf32>
    %32 = vector.multi_reduction <add>, %31, %cst_12 [1] : vector<1x128xf32> to vector<1xf32>
    %33 = vector.shape_cast %32 : vector<1xf32> to vector<1x1xf32>
    %34 = arith.mulf %30, %27 : vector<1x128xf32>
    %cst_13 = arith.constant dense<0.000000e+00> : vector<1xf32>
    %35 = vector.multi_reduction <add>, %34, %cst_13 [1] : vector<1x128xf32> to vector<1xf32>
    %36 = vector.shape_cast %35 : vector<1xf32> to vector<1x1xf32>
    %37 = arith.mulf %29, %27 : vector<1x128xf32>
    %cst_14 = arith.constant dense<0.000000e+00> : vector<1xf32>
    %38 = vector.multi_reduction <add>, %37, %cst_14 [1] : vector<1x128xf32> to vector<1xf32>
    %39 = vector.shape_cast %38 : vector<1xf32> to vector<1x1xf32>
    %40 = arith.mulf %27, %27 : vector<1x128xf32>
    %41 = arith.mulf %30, %40 : vector<1x128xf32>
    %cst_15 = arith.constant dense<0.000000e+00> : vector<1xf32>
    %42 = vector.multi_reduction <add>, %41, %cst_15 [1] : vector<1x128xf32> to vector<1xf32>
    %43 = vector.shape_cast %42 : vector<1xf32> to vector<1x1xf32>
    %44 = tpu.concatenate %21, %23, %25, %33, %36, %39, %43 in 0 : vector<4x1xf32>, vector<4x1xf32>, vector<4x1xf32>, vector<1x1xf32>, vector<1x1xf32>, vector<1x1xf32>, vector<1x1xf32> -> vector<16x1xf32>
    %c0_i32 = arith.constant 0 : i32
    %45 = arith.cmpi eq, %arg2, %c0_i32 : i32
    %46 = arith.extui %45 : i1 to i32
    %c0_i32_16 = arith.constant 0 : i32
    %47 = arith.cmpi ne, %46, %c0_i32_16 : i32
    scf.if %47 {
      %cst_23 = arith.constant 0.000000e+00 : f32
      %54 = vector.broadcast %cst_23 : f32 to vector<1x16x1xf32>
      %c0_24 = arith.constant 0 : index
      %c0_25 = arith.constant 0 : index
      %c0_26 = arith.constant 0 : index
      %55 = vector.load %arg6[%c0_24, %c0_25, %c0_26] : memref<1x16x1xf32, #tpu.memory_space<vmem>>, vector<1x16x1xf32>
      tpu.vector_store %arg6[%c0_24, %c0_25, %c0_26], %54 {strides = array<i32>} : memref<1x16x1xf32, #tpu.memory_space<vmem>>, vector<1x16x1xf32>,
    } else {
    }
    %c0_17 = arith.constant 0 : index
    %c0_18 = arith.constant 0 : index
    %c0_19 = arith.constant 0 : index
    %48 = vector.load %arg6[%c0_17, %c0_18, %c0_19] : memref<1x16x1xf32, #tpu.memory_space<vmem>>, vector<1x16x1xf32>
    %49 = vector.shape_cast %48 : vector<1x16x1xf32> to vector<16x1xf32>
    %50 = arith.addf %49, %44 : vector<16x1xf32>
    %c0_20 = arith.constant 0 : index
    %c0_21 = arith.constant 0 : index
    %c0_22 = arith.constant 0 : index
    %51 = vector.load %arg6[%c0_20, %c0_21, %c0_22] : memref<1x16x1xf32, #tpu.memory_space<vmem>>, vector<1x16x1xf32>
    %52 = vector.shape_cast %51 : vector<1x16x1xf32> to vector<16x1xf32>
    %53 = vector.shape_cast %50 : vector<16x1xf32> to vector<1x16x1xf32>
    tpu.vector_store %arg6[%c0_20, %c0_21, %c0_22], %53 {strides = array<i32>} : memref<1x16x1xf32, #tpu.memory_space<vmem>>, vector<1x16x1xf32>,
    return
  }
  func.func @transform_0(%arg0: i32, %arg1: i32, %arg2: i32) -> (i32, i32, i32) {
    %c4_i32 = arith.constant 4 : i32
    %0 = arith.muli %arg1, %c4_i32 : i32
    %1 = arith.addi %0, %arg2 : i32
    %c0_i32 = arith.constant 0 : i32
    %c0_i32_0 = arith.constant 0 : i32
    return %arg0, %c0_i32, %1 : i32, i32, i32
  }
  func.func @transform_1(%arg0: i32, %arg1: i32, %arg2: i32) -> (i32, i32, i32) {
    %c4_i32 = arith.constant 4 : i32
    %0 = arith.muli %arg1, %c4_i32 : i32
    %1 = arith.addi %0, %arg2 : i32
    %c0_i32 = arith.constant 0 : i32
    %c0_i32_0 = arith.constant 0 : i32
    return %arg0, %c0_i32, %1 : i32, i32, i32
  }
  func.func @transform_2(%arg0: i32, %arg1: i32, %arg2: i32) -> (i32, i32, i32) {
    %c4_i32 = arith.constant 4 : i32
    %0 = arith.muli %arg1, %c4_i32 : i32
    %1 = arith.addi %0, %arg2 : i32
    %c0_i32 = arith.constant 0 : i32
    %c0_i32_0 = arith.constant 0 : i32
    return %arg0, %c0_i32, %1 : i32, i32, i32
  }
  func.func @transform_3(%arg0: i32, %arg1: i32, %arg2: i32) -> (i32, i32, i32) {
    %c2_i32 = arith.constant 2 : i32
    %0 = arith.muli %arg0, %c2_i32 : i32
    %1 = arith.addi %0, %arg1 : i32
    %c0_i32 = arith.constant 0 : i32
    %c0_i32_0 = arith.constant 0 : i32
    %c0_i32_1 = arith.constant 0 : i32
    return %1, %c0_i32, %c0_i32_0 : i32, i32, i32
  }
}

</mosaic_0001>

<bundles_post_ra>
// kernel: tpu_custom_call.1
= control target key start
LH: loop header
LB: loop body
LE: loop exit
PB: predicated region body
PF: predicated region fallthrough
CT: control target
= control target key end

     0   :  { %s1092_s0 = inlined_call_operand.hbm [shape: f32[2,4,1024], index: 0, kind: input, shape index: {}]   ;;  %s1093_s1 = inlined_call_operand.hbm [shape: s32[2,1,1024], index: 1, kind: input, shape index: {}]   ;;  %s1094_s2 = inlined_call_operand.hbm [shape: f32[2,1,1024], index: 2, kind: input, shape index: {}]   ;;  %s1095_s3 = inlined_call_operand.vmem [shape: f32[4,16,1], index: 3, kind: output, shape index: {}]  }
   0x1   :  { %1103 = sst [smem:[#allocation15_spill]] %s1093_s1 }
   0x2   :  { %8 = vsyncpa [#allocation3], 0 }
   0x3   :  { %10 = vsyncpa [#allocation3 + $0x1], 0 }
   0x4   :  { %11 = vsyncpa [#allocation5], 0 }
   0x5   :  { %13 = vsyncpa [#allocation5 + $0x1], 0  ;;  %s894_s12 = smov 0   ;;  %s896_s13 = smov 0  }
   0x6   :  { %s898_s14 = smov 0   ;;  %s900_s15 = smov 0  }
   0x7   :  { %s902_s16 = smov 0   ;;  %s904_s17 = smov 0  }
   0x8   :  { %s906_s18 = smov 0   ;;  %s908_s19 = smov 0  }
   0x9   :  { %s910_s20 = smov 0   ;;  %s912_s21 = smov 0  }
   0xa LB: > { %1104 = sst [smem:[#allocation9_spill]] %s858_s18  ;;  %s1096_s22 = sadd.s32 4294967295, %s870_s21   ;;  %s870_s21 = sphi %s912_s21, %s19_s21   ;;  %s866_s20 = sphi %s910_s20, %s1121_s20   ;;  %s862_s19 = sphi %s908_s19, %s1120_s19   ;;  %s858_s18 = sphi %s906_s18, %s1119_s18   ;;  %s854_s17 = sphi %s904_s17, %s1118_s17   ;;  %s850_s16 = sphi %s902_s16, %s1117_s16   ;;  %s846_s15 = sphi %s900_s15, %s1116_s15   ;;  %s842_s14 = sphi %s898_s14, %s1124_s14   ;;  %s838_s13 = sphi %s896_s13, %s1123_s13   ;;  %s834_s12 = sphi %s894_s12, %s1122_s12  }
   0xb   : > { %1105 = sst [smem:[#allocation10_spill]] %s862_s19  ;;  %s31_s23 = sadd.s32 1, %s858_s18 }
   0xc   : > { %1106 = sst [smem:[#allocation11_spill]] %s866_s20  ;;  %p32_p0 = scmp.ge.s32.totalorder %s31_s23, 4 }
   0xd   : > { %s34_s24 = sadd.s32 1, %s862_s19  ;;  %s38_s25 = sadd.s32 1, %s866_s20 }
   0xe   : > { %s561_s26 = sshll.u32 %s862_s19, 2  ;;  %s1126_s23 = smov (%p32_p0, %s31_s23), 0 }
   0xf   : > { %1107 = sst [smem:[#allocation12_spill]] %s1126_s23  ;;  %s1128_s24 = smov (!%p32_p0, %s34_s24), %s862_s19 }
  0x10   : > { %s43_s27 = sadd.s32 %s858_s18, %s561_s26  ;;  %s51_s28 = sadd.s32 1, %s842_s14 }
  0x11   : > { %p36_p1 = scmp.ge.s32.totalorder %s1128_s24, 2  ;;  %p58_p2 = scmp.ne.s32.totalorder %s842_s14, %s838_s13 }
  0x12   : > { %p59_p3 = scmp.eq.s32.totalorder %s870_s21, 0  ;;  %p64_p4 = scmp.ne.s32.totalorder %s838_s13, %s834_s12 }
  0x13   : > { %s1130_s24 = smov (%p36_p1, %s1128_s24), 0  ;;  %s1132_s25 = smov (!%p36_p1, %s38_s25), %s866_s20 }
  0x14   : > { %1108 = sst [smem:[#allocation13_spill]] %s1130_s24  ;;  %s562_s29 = sshll.u32 %s1130_s24, 2 }
  0x15   : > { %p963_p5 = por %p59_p3, %p58_p2  ;;  %p40_p6 = scmp.ge.s32.totalorder %s1132_s25, 2 }
  0x16   : > { %s45_s4 = sadd.s32 %s562_s29, %s1126_s23  ;;  %p65_p7 = scmp.eq.s32.totalorder %s1096_s22, 0 }
  0x17   : > { %s47_s5 = ssub.s32 %s43_s27, %s45_s4  ;;  %s1134_s25 = smov (%p40_p6, %s1132_s25), 0 }
  0x18   : > { %1110 = sst [smem:[#allocation14_spill]] %s1134_s25  ;;  %p972_p8 = por %p65_p7, %p64_p4 }
  0x19   : > { %s46_s7 = ssub.s32 %s866_s20, %s1134_s25  ;;  %p605_p9 = scmp.lt.s32.totalorder %s870_s21, 16 }
  0x1a   : > { %s48_s8 = sor.u32 %s47_s5, %s46_s7  ;;  %s980_s9 = sand.u32 1, %s842_s14  }
  0x1b   : > { %p49_p10 = scmp.eq.s32.totalorder %s48_s8, 0  ;;  %s573_s10 = sshll.u32 %s866_s20, 3 }
  0x1c   : > { %s192_s11 = sadd.s32 %s573_s10, %s43_s27  ;;  %p985_p11 = pnand %p605_p9, %p963_p5 }
  0x1d   : > { %s990_s26 = scalar_select %p49_p10, %s842_s14, %s51_s28  }
  0x1e   : > { %s205_s29 = sand.u32 1, %s870_s21   ;;  %s1113_s1 = sld [smem:[#allocation15_spill]] }
  0x1f   : > { %s208_s7 = scalar_lea.vmem [#allocation4], %s980_s9  ;;  %p579_p12 = scmp.ge.s32.totalorder %s870_s21, 1 }
  0x20   : > { %s219_s25 = sshll.u32 %s208_s7, 4  ;;  %s206_s27 = scalar_lea.sflag [#allocation5], %s205_s29  ;;  %s220_s25 = int_to_ptr.vmem [resolvable:$true] %s219_s25 }
  0x21   : > { %p245_p13 = scmp.lt.s32.totalorder %s870_s21, 17  ;;  %s571_s30 = sshll.u32 %s980_s9, 2 }
  0x22   : > { %s574_s22 = sshll.u32 %s192_s11, 2  ;;  %s183_s29 = scalar_lea.sflag [#allocation3], %s980_s9 }
  0x23   : > { %p1001_p0 = pnand %p579_p12, %p245_p13  ;;  %s194_s4 = scalar_lea.hbm %s1092_s0, %s574_s22 }
  0x24   : > { %s215_s5 = scalar_lea.hbm %s1113_s1, %s192_s11  ;;  %s196_s1 = sshll.u32 %s194_s4, 4  ;;  %s197_s1 = int_to_ptr.hbm [resolvable:$true] %s196_s1 }
  0x25   : > { %s217_s24 = sshll.u32 %s215_s5, 4  ;;  %s186_s5 = scalar_lea.vmem [#allocation2], %s571_s30  ;;  %s218_s24 = int_to_ptr.hbm [resolvable:$true] %s217_s24 }
  0x26   : > { %601 = dma.hbm_to_vmem [thread:$0]  (!%p985_p11), %s218_s24, 16, %s220_s25, %s206_s27  }
  0x27   : > { %s198_s7 = sshll.u32 %s186_s5, 4  ;;  %s236_s23 = scalar_lea.hbm %s1094_s2, %s192_s11  ;;  %s199_s7 = int_to_ptr.vmem [resolvable:$true] %s198_s7 }
  0x28   : > { %598 = dma.hbm_to_vmem [thread:$0]  (!%p985_p11), %s197_s1, 64, %s199_s7, %s183_s29  }
  0x29   : > { %s229_s20 = scalar_lea.vmem [#allocation6], %s980_s9  ;;  %s238_s18 = sshll.u32 %s236_s23, 4  ;;  %s239_s18 = int_to_ptr.hbm [resolvable:$true] %s238_s18 }
  0x2a   : > { %s240_s19 = sshll.u32 %s229_s20, 4  ;;  %249 = sbr.rel (%p1001_p0) target bundleno = 248 (0xf8), region = 32  ;;  %s241_s19 = int_to_ptr.vmem [resolvable:$true] %s240_s19 }
  0x2b   : > { %604 = dma.hbm_to_vmem [thread:$0]  (!%p985_p11), %s239_s18, 16, %s241_s19, %s206_s27  }
  0x2c   : > { %s1021_s30 = sand.u32 (!%p1001_p0), 1, %s838_s13  }
  0x2d   : > { %s580_s1 = sshll.u32 (!%p1001_p0), %s1021_s30, 2  ;;  %s252_s22 = scalar_lea.sflag (!%p1001_p0), [#allocation3], %s1021_s30 }
  0x2e   : > { %s255_s8 = scalar_lea.vmem (!%p1001_p0), [#allocation2], %s580_s1 }
  0x2f   : > { %825 = dma.done.wait (%p972_p8), %s252_s22, 64  }
  0x30   : > { %827 = vsyncadd (%p972_p8), %s252_s22, 4294967232  ;;  %s1115_s20 = sadd.s32 4294967295, %s870_s21   ;;  %s264_s23 = scalar_lea.vmem [#allocation4], %s1021_s30 }
  0x31   : > { %s261_s18 = sand.u32 1, %s1115_s20  }
  0x32   : > { %s262_s19 = scalar_lea.sflag [#allocation5], %s261_s18 }
  0x33   : > { %829 = dma.done.wait (%p972_p8), %s262_s19, 32  }
  0x34   : > { %831 = vsyncadd (%p972_p8), %s262_s19, 4294967264  ;;  %vm324_vm0 = vcmask 1043456   ;;  %v322_v0 = vld [vmem:[%s255_s8] sm:$0xf]  ;;  %v344_v8 = vlaneseq  ;;  %v872_v13 = vmov 0.0   ;;  %s273_s6 = scalar_lea.vmem [#allocation6], %s1021_s30 }
  0x35   : > { %v325_v1 = vsel %vm324_vm0, %v322_v0, -inf  ;;  %v689_v11 = vld [vmem:[%s264_s23] ss:$0 sm:$0xff]  ;;  %vm365_vm2 = vcmask 1042434   ;;  %s581_s9 = sshll.u32 %s854_s17, 1  ;;  %vm402_vm3 = vcmask 1044480  }
  0x36   : > { %v326_v2 = vrot.slane %v325_v1, 4  ;;  %v345_v10 = vshrl.u32 %v344_v8, 7  ;;  %v688_v16 = vld [vmem:[%s273_s6] ss:$0 sm:$0xff]  ;;  %s314_s11 = sadd.s32 %s850_s16, %s581_s9  ;;  %vm404_vm4 = vcmask 1045504   ;;  %vm406_vm5 = vcmask 1046528  }
  0x37   : > { %v360_v27 = vld [vmem:[%s273_s6] sm:$0x1]  ;;  %p315_p1 = scmp.lt.s32.totalorder %s314_s11, 3  ;;  %p585_p2 = scmp.ne.s32.totalorder %s846_s15, 0 }
  0x38   : > { %v327_v3 = vmax.f32 %v325_v1, %v326_v2  ;;  %vm347_vm1 = vcmp.eq.s32.totalorder %v345_v10, %v689_v11  ;;  %v377_v28 = vmul.f32 %v360_v27, %v360_v27 }
  0x39   : > { %v584_v14 = vsel %vm347_vm1, 1.0, %v872_v13  ;;  %s1136_s11 = smov (!%p315_p1, %s314_s11), 3 }
  0x3a   : > { %v328_v4 = vrot.slane %v327_v3, 2  ;;  %v357_v15 = vsel %vm324_vm0, %v584_v14, 0.0  ;;  %v373_v18 = vmul.f32 %v688_v16, %v584_v14  ;;  %v379_v31 = vperm.slane %v377_v28, 0  ;;  %s588_s12 = sshll.u32 %s1136_s11, 4 }
  0x3b   : > { %358 = vadd.xlane.f32.xlu1 %v357_v15  ;;  %s1049_s10 = scalar_lea.vmem %s1095_s3, %s588_s12 }
  0x3c   : > { %v329_v5 = vmax.f32 %v327_v3, %v328_v4  ;;  %v374_v21 = vsel %vm365_vm2, %v373_v18, 0.0 }
  0x3e   : > { %v330_v6 = vrot.slane %v329_v5, 1 }
  0x40   : > { %v331_v7 = vmax.f32 %v329_v5, %v330_v6 }
  0x42   : > { %v332_v9 = vsub.f32 %v322_v0, %v331_v7 }
  0x43   : > { %375 = vadd.xlane.f32.xlu1 %v374_v21 }
  0x44   : > { %v333_v12 = vmul.f32 1.442695, %v332_v9 }
  0x46   : > { %690 = vpow2.f32 %v333_v12 }
  0x4c   : > { %v691_v17 = vpop.eup %690 }
  0x4d   : > { %v335_v19 = vsel %vm324_vm0, %v691_v17, 0.0 }
  0x4e   : > { %v336_v20 = vrot.slane %v335_v19, 4 }
  0x50   : > { %v337_v22 = vadd.f32 %v336_v20, %v335_v19 }
  0x52   : > { %v338_v23 = vrot.slane %v337_v22, 2 }
  0x54   : > { %v339_v24 = vadd.f32 %v338_v23, %v337_v22 }
  0x56   : > { %v340_v25 = vrot.slane %v339_v24, 1 }
  0x58   : > { %v341_v26 = vadd.f32 %v340_v25, %v339_v24 }
  0x5a   : > { %692 = vrcp.f32 %v341_v26 }
  0x60   : > { %v693_v29 = vpop.eup %692 }
  0x61   : > { %v343_v30 = vmul.f32 %v693_v29, %v691_v17 }
  0x63   : > { %v364_v32 = vmul.f32 %v688_v16, %v343_v30  ;;  %v350_v33 = vmul.f32 %v584_v14, %v343_v30  ;;  %v354_v34 = vsel %vm324_vm0, %v343_v30, 0.0 }
  0x64   : > { %355 = vadd.xlane.f32.xlu2 %v354_v34 }
  0x65   : > { %v366_v35 = vsel %vm365_vm2, %v364_v32, 0.0  ;;  %v381_v36 = vmul.f32 %v379_v31, %v350_v33  ;;  %v369_v37 = vmul.f32 %v688_v16, %v350_v33  ;;  %v351_v40 = vsel %vm324_vm0, %v350_v33, 0.0 }
  0x66   : > { %367 = vadd.xlane.f32.xlu0 %v366_v35 }
  0x67   : > { %v382_v38 = vsel %vm365_vm2, %v381_v36, 0.0  ;;  %v370_v39 = vsel %vm365_vm2, %v369_v37, 0.0 }
  0x6c   : > { %383 = vadd.xlane.f32.xlu2 %v382_v38 }
  0x6e   : > { %371 = vadd.xlane.f32.xlu0 %v370_v39 }
  0x76   : > { %352 = vadd.xlane.f32.xlu0 %v351_v40 }
  0xae   : > { %v359_v41 = vpop.xlane.xlu1 %358 }
  0xb6   : > { %v376_v44 = vpop.xlane.xlu1 %375 }
  0xb7   : > { %v395_v48 = vrot.slane %v376_v44, 4 }
  0xd7   : > { %v356_v42 = vpop.xlane.xlu2 %355 }
  0xd8   : > { %v386_v55 = vrot.slane %v356_v42, 4 }
  0xd9   : > { %v368_v43 = vpop.xlane.xlu0 %367 }
  0xda   : > { %v389_v45 = vrot.slane %v368_v43, 6 }
  0xdc   : > { %v401_v51 = vsel %vm324_vm0, %v359_v41, %v389_v45 }
  0xdf   : > { %v384_v46 = vpop.xlane.xlu2 %383 }
  0xe0   : > { %v398_v50 = vrot.slane %v384_v46, 3 }
  0xe1   : > { %v372_v47 = vpop.xlane.xlu0 %371 }
  0xe2   : > { %v392_v49 = vrot.slane %v372_v47, 5 }
  0xe4   : > { %v403_v52 = vsel %vm402_vm3, %v401_v51, %v392_v49 }
  0xe5   : > { %v405_v53 = vsel %vm404_vm4, %v403_v52, %v395_v48 }
  0xe6   : > { %v407_v54 = vsel %vm406_vm5, %v405_v53, %v398_v50  ;;  %411 = sbr.rel (%p585_p2) target bundleno = 238 (0xee), region = 48 }
  0xe9   : > { %v353_v56 = vpop.xlane.xlu0 %352 }
  0xea   : > { %v400_v57 = vsel %vm324_vm0, %v353_v56, %v386_v55 }
  0xeb   : > { %vm412_vm6 = vcmask 7168   ;;  %v873_v58 = vmov 0.0  }
  0xec   : > { %413 = vst.msk [vmem:[%s1049_s10] sm:$0xff] %vm412_vm6, %v873_v58 }
  0xed   : > { %414 = vst.msk [vmem:[%s1049_s10 + $0x8] sm:$0xff] %vm412_vm6, %v873_v58 }
  0xee PF: > { %vm419_vm7 = vcmask 7168  }
  0xf3   : > { %v415_v59 = vld [vmem:[%s1049_s10] sm:$0xff] }
  0xf4   : > { %v416_v60 = vld [vmem:[%s1049_s10 + $0x8] sm:$0xff]  ;;  %v417_v61 = vadd.f32 %v415_v59, %v400_v57 }
  0xf5   : > { %v418_v62 = vadd.f32 %v416_v60, %v407_v54 }
  0xf6   : > { %420 = vst.msk [vmem:[%s1049_s10] sm:$0xff] %vm419_vm7, %v417_v61 }
  0xf7   : > { %421 = vst.msk [vmem:[%s1049_s10 + $0x8] sm:$0xff] %vm419_vm7, %v418_v62 }
  0xf8 PF: > { %s19_s21 = sadd.s32 1, %s870_s21   ;;  %s1116_s15 = sld [smem:[#allocation9_spill]] }
  0xf9   : > { %p16_p3 = scmp.ge.s32.totalorder %s19_s21, 18   ;;  %s1117_s16 = sld [smem:[#allocation10_spill]] }
  0xfa   : > { %s1118_s17 = sld [smem:[#allocation11_spill]]  ;;  %s1122_s12 = smov %s838_s13 }
  0xfb   : > { %s1119_s18 = sld [smem:[#allocation12_spill]]  ;;  %s1123_s13 = smov %s842_s14 }
  0xfc   : > { %s1120_s19 = sld [smem:[#allocation13_spill]]  ;;  %s1124_s14 = smov %s990_s26 }
  0xfd   : > { %s1121_s20 = sld [smem:[#allocation14_spill]]  ;;  %18 = sbr.rel (!%p16_p3) target bundleno = 10 (0xa), region = 100 }
 0x102   :  { %449 = vsyncpa [#allocation3], 1 }
 0x103   :  { %451 = vsyncpa [#allocation3 + $0x1], 1 }
 0x104   :  { %452 = vsyncpa [#allocation5], 1 }
 0x105   :  { %454 = vsyncpa [#allocation5 + $0x1], 1 }

</bundles_post_ra>
